<compile_context>
chip_gen: v7x
topology: tpu7x:2x2x1
jax: 0.10.0
libtpu: 0.0.40
codegen_flags: <defaults>
</compile_context>

<pallas_src>
import functools

import jax
import jax.numpy as jnp
from jax import lax
from jax.experimental import pallas as pl
from jax.experimental.pallas import tpu as pltpu

LANES = 128
SUBLANES = 8
CHUNK_ROWS = 512                        # in-kernel sub-tile: 512*128*4B = 256 KiB f32
TARGET_BLOCK_BYTES = 4 * 1024 * 1024    # ~4 MiB per input per pipeline buffer
VMEM_LIMIT_BYTES = 48 * 1024 * 1024     # > v5e 16 MiB default, < v7x 64 MiB physical


def _dice_kernel(p_ref, t_ref, acc_i_ref, acc_d_ref, *,
                 block_rows, chunk_rows, blocks_per_core, blocks_total,
                 rows_total, tail_exists):
    c = pl.program_id(0)          # core-split axis ("parallel")
    i = pl.program_id(1)          # reduction axis  ("arbitrary")

    # Resident output accumulator blocks: zero once per core.
    @pl.when(i == 0)
    def _():
        acc_i_ref[...] = jnp.zeros_like(acc_i_ref)
        acc_d_ref[...] = jnp.zeros_like(acc_d_ref)

    block_idx = c * blocks_per_core + i
    n_chunks = block_rows // chunk_rows

    def reduce_block(masked):
        def body(j, carry):
            ai, ad = carry
            r0 = pl.multiple_of(j * chunk_rows, chunk_rows)
            p = p_ref[pl.ds(r0, chunk_rows), :].astype(jnp.float32)
            t = t_ref[pl.ds(r0, chunk_rows), :].astype(jnp.float32)
            if masked:
                # Row-granular validity.  Only the single global last block
                # (partial final block) ever runs this branch.
                row = (block_idx * block_rows + r0
                       + lax.broadcasted_iota(jnp.int32, (chunk_rows, LANES), 0))
                valid = row < rows_total
                # Mask BEFORE mul/add so never-DMA'd garbage cannot propagate.
                p = jnp.where(valid, p, 0.0)
                t = jnp.where(valid, t, 0.0)
            # (chunk_rows,128) -> (8,128) via pure vreg-wise VPU adds; carry
            # two vreg-resident partials, no cross-lane XLU work in the loop.
            ai = ai + jnp.sum((p * t).reshape(-1, SUBLANES, LANES), axis=0)
            ad = ad + jnp.sum((p + t).reshape(-1, SUBLANES, LANES), axis=0)
            return ai, ad

        zero = jnp.zeros((SUBLANES, LANES), jnp.float32)
        ai, ad = lax.fori_loop(0, n_chunks, body, (zero, zero))
        acc_i_ref[...] += ai
        acc_d_ref[...] += ad

    if tail_exists:
        is_tail = block_idx == (blocks_total - 1)

        @pl.when(jnp.logical_not(is_tail))
        def _():
            reduce_block(masked=False)

        @pl.when(is_tail)
        def _():
            reduce_block(masked=True)
    else:
        reduce_block(masked=False)


def _dice_formula(intersection, denom, smooth):
    dice = (2.0 * intersection + smooth) / (denom + smooth)
    return (1.0 - dice).astype(jnp.float32)


def dice_loss_pallas(preds, targets, smooth=1.0):
    assert preds.shape == targets.shape
    p_flat = preds.reshape(-1)
    t_flat = targets.reshape(-1)
    n = p_flat.shape[0]

    if n < SUBLANES * LANES:
        # Degenerate tiny input: not worth a kernel launch.
        pf = p_flat.astype(jnp.float32)
        tf = t_flat.astype(jnp.float32)
        return _dice_formula(jnp.sum(pf * tf), jnp.sum(pf) + jnp.sum(tf), smooth)

    rem = n % LANES
    if rem:
        # TODO(synk): a 1-D BlockSpec would avoid this O(n) pad copy for
        # lane-unaligned inputs; kept the robust 2-D (rows,128) tiling.
        pad = LANES - rem
        p_flat = jnp.pad(p_flat, (0, pad))
        t_flat = jnp.pad(t_flat, (0, pad))

    rows = p_flat.shape[0] // LANES          # padded rows (if any) are zeros
    p2 = p_flat.reshape(rows, LANES)         # row-major reshape: no data movement
    t2 = t_flat.reshape(rows, LANES)

    # dtype-aware block sizing: ~TARGET_BLOCK_BYTES per input per buffer.
    itemsize = max(p2.dtype.itemsize, t2.dtype.itemsize)
    target_rows = max(SUBLANES, TARGET_BLOCK_BYTES // (LANES * itemsize))

    chunk_rows = min(CHUNK_ROWS, (rows // SUBLANES) * SUBLANES)   # multiple of 8
    chunks_per_block = max(1, min(target_rows // chunk_rows, rows // chunk_rows))
    block_rows = chunks_per_block * chunk_rows                    # <= rows
    blocks_total = pl.cdiv(rows, block_rows)
    tail_exists = (rows % block_rows) != 0

    # Split across TensorCores (v7x megacore) only when the split is clean:
    # no clamped/duplicate block reads, no extra mask work.
    ncores = 2 if (blocks_total % 2 == 0 and blocks_total >= 8) else 1
    blocks_per_core = blocks_total // ncores

    kernel = functools.partial(
        _dice_kernel,
        block_rows=block_rows,
        chunk_rows=chunk_rows,
        blocks_per_core=blocks_per_core,
        blocks_total=blocks_total,
        rows_total=rows,
        tail_exists=tail_exists,
    )

    def in_map(c, i):
        return (c * blocks_per_core + i, 0)

    acc_shape = jax.ShapeDtypeStruct((ncores * SUBLANES, LANES), jnp.float32)
    cost = pl.CostEstimate(
        flops=4 * rows * LANES,
        transcendentals=0,
        bytes_accessed=rows * LANES * (p2.dtype.itemsize + t2.dtype.itemsize)
        + 2 * ncores * SUBLANES * LANES * 4,
    )

    part_i, part_d = pl.pallas_call(
        kernel,
        out_shape=(acc_shape, acc_shape),
        grid_spec=pltpu.PrefetchScalarGridSpec(
            num_scalar_prefetch=0,
            grid=(ncores, blocks_per_core),
            in_specs=[
                pl.BlockSpec((block_rows, LANES), in_map),
                pl.BlockSpec((block_rows, LANES), in_map),
            ],
            out_specs=[
                pl.BlockSpec((SUBLANES, LANES), lambda c, i: (c, 0)),
                pl.BlockSpec((SUBLANES, LANES), lambda c, i: (c, 0)),
            ],
        ),
        compiler_params=pltpu.CompilerParams(
            dimension_semantics=("parallel", "arbitrary"),
            vmem_limit_bytes=VMEM_LIMIT_BYTES,
        ),
        cost_estimate=cost,
    )(p2, t2)

    # Tiny per-core vector accumulators -> scalars + dice formula in plain JAX.
    return _dice_formula(jnp.sum(part_i), jnp.sum(part_d), smooth)


def dice_loss_ref(preds, targets, smooth=1.0):
    p = preds.reshape(-1).astype(jnp.float32)
    t = targets.reshape(-1).astype(jnp.float32)
    inter = jnp.sum(p * t)
    dice = (2.0 * inter + smooth) / (jnp.sum(p) + jnp.sum(t) + smooth)
    return 1.0 - dice


if __name__ == "__main__":
    key = jax.random.PRNGKey(0)
    kp, kt = jax.random.split(key)

    # NCHW inputs consistent with a segmentation head: (batch=2, C=4, H=16, W=16)
    preds = jax.random.uniform(kp, (2, 4, 16, 16), dtype=jnp.float32)
    targets = (jax.random.uniform(kt, (2, 4, 16, 16)) > 0.5).astype(jnp.float32)

    out = dice_loss_pallas(preds, targets, smooth=1.0)
    out = jax.block_until_ready(out)

    ref = dice_loss_ref(preds, targets, smooth=1.0)
    assert jnp.allclose(out, ref, rtol=1e-5, atol=1e-5), (out, ref)

    print("KERNEL_OK")
</pallas_src>

<mosaic_0001>
module attributes {stable_mosaic.version = 11 : i64} {
  func.func @_dice_kernel(%arg0: i32, %arg1: i32, %arg2: memref<16x128xf32, #tpu.memory_space<vmem>>, %arg3: memref<16x128xf32, #tpu.memory_space<vmem>>, %arg4: memref<8x128xf32, #tpu.memory_space<vmem>>, %arg5: memref<8x128xf32, #tpu.memory_space<vmem>>) attributes {dimension_semantics = [#tpu.dimension_semantics<parallel>, #tpu.dimension_semantics<arbitrary>], iteration_bounds = array<i64: 1, 1>, scalar_prefetch = 0 : i64, scratch_operands = 0 : i64, tpu.core_type = #tpu.core_type<tc>, window_params = [{transform_indices = @transform_0, window_bounds = array<i64: 16, 128>}, {transform_indices = @transform_1, window_bounds = array<i64: 16, 128>}, {transform_indices = @transform_2, window_bounds = array<i64: 8, 128>}, {transform_indices = @transform_3, window_bounds = array<i64: 8, 128>}]} {
    %c0_i32 = arith.constant 0 : i32
    %0 = arith.cmpi eq, %arg1, %c0_i32 : i32
    %1 = arith.extui %0 : i1 to i32
    %c0_i32_0 = arith.constant 0 : i32
    %2 = arith.cmpi ne, %1, %c0_i32_0 : i32
    scf.if %2 {
      %cst_13 = arith.constant 0.000000e+00 : f32
      %24 = vector.broadcast %cst_13 : f32 to vector<8x128xf32>
      %c0_14 = arith.constant 0 : index
      %c0_15 = arith.constant 0 : index
      %25 = vector.load %arg4[%c0_14, %c0_15] : memref<8x128xf32, #tpu.memory_space<vmem>>, vector<8x128xf32>
      tpu.vector_store %arg4[%c0_14, %c0_15], %24 {strides = array<i32>} : memref<8x128xf32, #tpu.memory_space<vmem>>, vector<8x128xf32>,
      %cst_16 = arith.constant 0.000000e+00 : f32
      %26 = vector.broadcast %cst_16 : f32 to vector<8x128xf32>
      %c0_17 = arith.constant 0 : index
      %c0_18 = arith.constant 0 : index
      %27 = vector.load %arg5[%c0_17, %c0_18] : memref<8x128xf32, #tpu.memory_space<vmem>>, vector<8x128xf32>
      tpu.vector_store %arg5[%c0_17, %c0_18], %26 {strides = array<i32>} : memref<8x128xf32, #tpu.memory_space<vmem>>, vector<8x128xf32>,
    } else {
    }
    %cst = arith.constant 0.000000e+00 : f32
    %3 = vector.broadcast %cst : f32 to vector<8x128xf32>
    %c0_i32_1 = arith.constant 0 : i32
    %c16_i32 = arith.constant 16 : i32
    %4 = arith.muli %c0_i32_1, %c16_i32 : i32
    %5 = tpu.assume_multiple %4, 16 : i32
    %6 = arith.index_cast %5 : i32 to index
    %c0 = arith.constant 0 : index
    %7 = vector.load %arg2[%6, %c0] : memref<16x128xf32, #tpu.memory_space<vmem>>, vector<16x128xf32>
    %8 = arith.index_cast %5 : i32 to index
    %c0_2 = arith.constant 0 : index
    %9 = vector.load %arg3[%8, %c0_2] : memref<16x128xf32, #tpu.memory_space<vmem>>, vector<16x128xf32>
    %10 = arith.mulf %7, %9 : vector<16x128xf32>
    %11 = vector.shape_cast %10 : vector<16x128xf32> to vector<2x8x128xf32>
    %cst_3 = arith.constant dense<0.000000e+00> : vector<8x128xf32>
    %12 = vector.multi_reduction <add>, %11, %cst_3 [0] : vector<2x8x128xf32> to vector<8x128xf32>
    %13 = arith.addf %3, %12 : vector<8x128xf32>
    %14 = arith.addf %7, %9 : vector<16x128xf32>
    %15 = vector.shape_cast %14 : vector<16x128xf32> to vector<2x8x128xf32>
    %cst_4 = arith.constant dense<0.000000e+00> : vector<8x128xf32>
    %16 = vector.multi_reduction <add>, %15, %cst_4 [0] : vector<2x8x128xf32> to vector<8x128xf32>
    %17 = arith.addf %3, %16 : vector<8x128xf32>
    %c1_i32 = arith.constant 1 : i32
    %c0_5 = arith.constant 0 : index
    %c0_6 = arith.constant 0 : index
    %18 = vector.load %arg4[%c0_5, %c0_6] : memref<8x128xf32, #tpu.memory_space<vmem>>, vector<8x128xf32>
    %19 = arith.addf %18, %13 : vector<8x128xf32>
    %c0_7 = arith.constant 0 : index
    %c0_8 = arith.constant 0 : index
    %20 = vector.load %arg4[%c0_7, %c0_8] : memref<8x128xf32, #tpu.memory_space<vmem>>, vector<8x128xf32>
    tpu.vector_store %arg4[%c0_7, %c0_8], %19 {strides = array<i32>} : memref<8x128xf32, #tpu.memory_space<vmem>>, vector<8x128xf32>,
    %c0_9 = arith.constant 0 : index
    %c0_10 = arith.constant 0 : index
    %21 = vector.load %arg5[%c0_9, %c0_10] : memref<8x128xf32, #tpu.memory_space<vmem>>, vector<8x128xf32>
    %22 = arith.addf %21, %17 : vector<8x128xf32>
    %c0_11 = arith.constant 0 : index
    %c0_12 = arith.constant 0 : index
    %23 = vector.load %arg5[%c0_11, %c0_12] : memref<8x128xf32, #tpu.memory_space<vmem>>, vector<8x128xf32>
    tpu.vector_store %arg5[%c0_11, %c0_12], %22 {strides = array<i32>} : memref<8x128xf32, #tpu.memory_space<vmem>>, vector<8x128xf32>,
    return
  }
  func.func @transform_0(%arg0: i32, %arg1: i32) -> (i32, i32) {
    %c1_i32 = arith.constant 1 : i32
    %0 = arith.muli %arg0, %c1_i32 : i32
    %1 = arith.addi %0, %arg1 : i32
    %c0_i32 = arith.constant 0 : i32
    %c0_i32_0 = arith.constant 0 : i32
    return %1, %c0_i32 : i32, i32
  }
  func.func @transform_1(%arg0: i32, %arg1: i32) -> (i32, i32) {
    %c1_i32 = arith.constant 1 : i32
    %0 = arith.muli %arg0, %c1_i32 : i32
    %1 = arith.addi %0, %arg1 : i32
    %c0_i32 = arith.constant 0 : i32
    %c0_i32_0 = arith.constant 0 : i32
    return %1, %c0_i32 : i32, i32
  }
  func.func @transform_2(%arg0: i32, %arg1: i32) -> (i32, i32) {
    %c0_i32 = arith.constant 0 : i32
    %c0_i32_0 = arith.constant 0 : i32
    return %arg0, %c0_i32 : i32, i32
  }
  func.func @transform_3(%arg0: i32, %arg1: i32) -> (i32, i32) {
    %c0_i32 = arith.constant 0 : i32
    %c0_i32_0 = arith.constant 0 : i32
    return %arg0, %c0_i32 : i32, i32
  }
}

</mosaic_0001>

<bundles_post_ra>
// kernel: tpu_custom_call.1
= control target key start
LH: loop header
LB: loop body
LE: loop exit
PB: predicated region body
PF: predicated region fallthrough
CT: control target
= control target key end

     0   :  { %9 = vsyncpa [#allocation3], 0  ;;  %s286_s0 = inlined_call_operand.hbm [shape: f32[16,128], index: 0, kind: input, shape index: {}]   ;;  %s287_s1 = inlined_call_operand.hbm [shape: f32[16,128], index: 1, kind: input, shape index: {}]   ;;  %s288_s2 = inlined_call_operand.hbm [shape: f32[8,128], index: 2, kind: output, shape index: {0}]   ;;  %s289_s3 = inlined_call_operand.hbm [shape: f32[8,128], index: 3, kind: output, shape index: {1}]  }
   0x1   :  { %10 = vsyncpa [#allocation6], 0 }
   0x2   :  { %11 = vsyncpa [#allocation4], 0 }
   0x3   :  { %12 = vsyncpa [#allocation9], 0  ;;  %s212_s12 = smov [#allocation2]   ;;  %s116_s16 = scalar_lea.hbm %s286_s0, 256 }
   0x4   :  { %s22_s13 = sshll.u32 %s212_s12, 4  ;;  %p117_p0 = scmp.ne.s32.totalorder %s286_s0, %s116_s16  ;;  %s23_s13 = int_to_ptr.vmem [resolvable:$true] %s22_s13 }
   0x5   :  { %p120_p1 = scmp.lt.u32.totalorder %s116_s16, %s286_s0 }
   0x7   :  { %p122_p2 = pnand %p120_p1, %p117_p0 }
   0x9   :  { %125 = shalt.err (!%p122_p2)
}
   0xa   :  { %s126_s21 = scalar_lea.vmem %s23_s13, 256  ;;  %p131_p4 = scmp.lt.s32.totalorder %s23_s13, %s23_s13 }
   0xb   :  { %p127_p3 = scmp.ne.s32.totalorder %s23_s13, %s126_s21  ;;  %p132_p5 = scmp.lt.s32.totalorder %s126_s21, %s126_s21 }
   0xd   :  { %p133_p6 = por %p132_p5, %p131_p4 }
   0xf   :  { %p134_p7 = pnand %p133_p6, %p127_p3 }
  0x11   :  { %137 = shalt.err (!%p134_p7)
}
  0x12   :  { %s213_s22 = smov 128   ;;  %s214_s23 = smov 8  }
  0x13   :  { %28 = dma.hbm_to_vmem [thread:$0]  %s286_s0, 256, %s23_s13, [#allocation3], %s213_s22, %s213_s22, %s214_s23  }
  0x14   :  { %s215_s26 = smov [#allocation5]   ;;  %s138_s30 = scalar_lea.hbm %s287_s1, 256 }
  0x15   :  { %s38_s27 = sshll.u32 %s215_s26, 4  ;;  %p139_p8 = scmp.ne.s32.totalorder %s287_s1, %s138_s30  ;;  %s39_s27 = int_to_ptr.vmem [resolvable:$true] %s38_s27 }
  0x16   :  { %p142_p9 = scmp.lt.u32.totalorder %s138_s30, %s287_s1 }
  0x18   :  { %p144_p10 = pnand %p142_p9, %p139_p8 }
  0x1a   :  { %147 = shalt.err (!%p144_p10)
}
  0x1b   :  { %s148_s8 = scalar_lea.vmem %s39_s27, 256  ;;  %p153_p12 = scmp.lt.s32.totalorder %s39_s27, %s39_s27 }
  0x1c   :  { %p149_p11 = scmp.ne.s32.totalorder %s39_s27, %s148_s8  ;;  %p154_p13 = scmp.lt.s32.totalorder %s148_s8, %s148_s8 }
  0x1e   :  { %p155_p0 = por %p154_p13, %p153_p12 }
  0x20   :  { %p156_p1 = pnand %p155_p0, %p149_p11 }
  0x22   :  { %159 = shalt.err (!%p156_p1)
}
  0x23   :  { %44 = dma.hbm_to_vmem [thread:$0]  %s287_s1, 256, %s39_s27, [#allocation6], %s213_s22, %s213_s22, %s214_s23  }
  0x24   :  { %204 = dma.done.wait [#allocation3], 256  }
  0x25   :  { %205 = vsyncadd [#allocation3], 4294967040 }
  0x26   :  { %206 = dma.done.wait [#allocation6], 256  }
  0x27   :  { %207 = vsyncadd [#allocation6], 4294967040  ;;  %v61_v0 = vld [vmem:[#allocation2] sm:$0xff]  ;;  %v62_v1 = vld [vmem:[#allocation2 + $0x8] sm:$0xff]  ;;  %s216_s10 = smov [#allocation7]   ;;  %s217_s12 = smov [#allocation8]  }
  0x28   :  { %v63_v2 = vld [vmem:[#allocation5] sm:$0xff]  ;;  %v64_v3 = vld [vmem:[#allocation5 + $0x8] sm:$0xff]  ;;  %s85_s11 = sshll.u32 %s216_s10, 4  ;;  %s95_s13 = sshll.u32 %s217_s12, 4  ;;  %s86_s11 = int_to_ptr.vmem [resolvable:$true] %s85_s11  ;;  %s96_s13 = int_to_ptr.vmem [resolvable:$true] %s95_s13 }
  0x29   :  { %v65_v4 = vmul.f32 %v63_v2, %v61_v0  ;;  %v69_v5 = vadd.f32 %v63_v2, %v61_v0  ;;  %v66_v6 = vmul.f32 %v64_v3, %v62_v1  ;;  %v70_v7 = vadd.f32 %v64_v3, %v62_v1  ;;  %s160_s1 = scalar_lea.vmem %s86_s11, 128  ;;  %p165_p3 = scmp.lt.s32.totalorder %s86_s11, %s86_s11 }
  0x2a   :  { %p161_p2 = scmp.ne.s32.totalorder %s86_s11, %s160_s1  ;;  %p166_p4 = scmp.lt.s32.totalorder %s160_s1, %s160_s1 }
  0x2b   :  { %v67_v8 = vadd.f32 %v66_v6, %v65_v4  ;;  %v71_v9 = vadd.f32 %v70_v7, %v69_v5 }
  0x2c   :  { %p167_p5 = por %p166_p4, %p165_p3 }
  0x2d   :  { %75 = vst [vmem:[#allocation7] sm:$0xff] %v67_v8  ;;  %78 = vst [vmem:[#allocation8] sm:$0xff] %v71_v9 }
  0x2e   :  { %p168_p6 = pnand %p167_p5, %p161_p2 }
  0x30   :  { %171 = shalt.err (!%p168_p6)
}
  0x31   :  { %s172_s16 = scalar_lea.hbm %s288_s2, 128 }
  0x32   :  { %p173_p7 = scmp.ne.s32.totalorder %s288_s2, %s172_s16  ;;  %p176_p8 = scmp.lt.u32.totalorder %s172_s16, %s288_s2 }
  0x34   :  { %p178_p9 = pnand %p176_p8, %p173_p7 }
  0x36   :  { %181 = shalt.err (!%p178_p9)
}
  0x37   :  { %88 = dma.vmem_to_hbm [thread:$0]  %s86_s11, 128, %s288_s2, [#allocation4]  }
  0x38   :  { %s182_s23 = scalar_lea.vmem %s96_s13, 128  ;;  %p187_p11 = scmp.lt.s32.totalorder %s96_s13, %s96_s13 }
  0x39   :  { %p183_p10 = scmp.ne.s32.totalorder %s96_s13, %s182_s23  ;;  %p188_p12 = scmp.lt.s32.totalorder %s182_s23, %s182_s23 }
  0x3b   :  { %p189_p13 = por %p188_p12, %p187_p11 }
  0x3d   :  { %p190_p0 = pnand %p189_p13, %p183_p10 }
  0x3f   :  { %193 = shalt.err (!%p190_p0)
}
  0x40   :  { %s194_s26 = scalar_lea.hbm %s289_s3, 128 }
  0x41   :  { %p195_p1 = scmp.ne.s32.totalorder %s289_s3, %s194_s26  ;;  %p198_p2 = scmp.lt.u32.totalorder %s194_s26, %s289_s3 }
  0x43   :  { %p200_p3 = pnand %p198_p2, %p195_p1 }
  0x45   :  { %203 = shalt.err (!%p200_p3)
}
  0x46   :  { %98 = dma.vmem_to_hbm [thread:$0]  %s96_s13, 128, %s289_s3, [#allocation9]  }
  0x47   :  { %208 = dma.done.wait [#allocation4], 128  }
  0x48   :  { %209 = vsyncadd [#allocation4], 4294967168 }
  0x49   :  { %210 = dma.done.wait [#allocation9], 128  }
  0x4a   :  { %211 = vsyncadd [#allocation9], 4294967168 }
  0x4b   :  { %105 = vsyncpa [#allocation3], 1 }
  0x4c   :  { %106 = vsyncpa [#allocation6], 1 }
  0x4d   :  { %107 = vsyncpa [#allocation4], 1 }
  0x4e   :  { %108 = vsyncpa [#allocation9], 1 }

</bundles_post_ra>
